<compile_context>
chip_gen: v5e
topology: v5e:2x2
jax: 0.10.0
libtpu: 0.0.40
codegen_flags: <defaults>
</compile_context>

<pallas_src>
import functools

import jax
import jax.numpy as jnp
from jax import lax
from jax.experimental import pallas as pl
from jax.experimental.pallas import tpu as pltpu


def _round_up(x: int, m: int) -> int:
    return -(-x // m) * m


def _round_down(x: int, m: int) -> int:
    return max(m, (x // m) * m)


def _device_kind() -> str:
    try:
        return jax.devices()[0].device_kind.lower()
    except Exception:
        return ""


def _vmem_capacity_bytes() -> int:
    """Physical VMEM per TensorCore; per-generation fallback if query fails."""
    try:
        info = pltpu.get_tpu_info()
        cap = getattr(info, "vmem_capacity_bytes", None)
        if cap:
            return int(cap)
    except Exception:
        pass
    kind = _device_kind()
    if "v7" in kind:
        return 64 << 20
    if kind:                      # v5e / v5p / v6e all carry 128 MiB per TC
        return 128 << 20
    return 64 << 20               # unknown backend: be conservative


def _num_tensorcores() -> int:
    """TensorCores per chip (2 on v7x, 1 on v5e/v6e)."""
    try:
        info = pltpu.get_tpu_info()
        for attr in ("num_cores", "num_tensorcores", "tensorcore_count", "core_count"):
            v = getattr(info, attr, None)
            if v:
                return int(v)
    except Exception:
        pass
    return 2 if "v7" in _device_kind() else 1


def _rmsnorm_kernel(x_ref, w_ref, o_ref, *, eps: float, inv_dim: float):
    # x_ref: (tm, dim) block, w_ref: (1, dim) in the multiply dtype, o_ref: (tm, dim).
    x = x_ref[...].astype(jnp.float32)                        # x.float()
    ms = jnp.sum(x * x, axis=-1, keepdims=True) * inv_dim     # mean(x^2) = sum * 1/dim
    normed = x * lax.rsqrt(ms + eps)                          # rsqrt rides the EUP slot
    if x_ref.dtype != jnp.float32:
        normed = normed.astype(x_ref.dtype)                   # .type_as(x)
    # Weight is pre-cast in the wrapper: x.dtype on the low-traffic default path
    # (single packed mul for bf16 on v6e/v7x), f32 on the strict-parity path.
    out = normed.astype(w_ref.dtype) * w_ref[...]
    o_ref[...] = out.astype(o_ref.dtype)


def _pick_row_tile(rows: int, dim: int, in_bytes: int, out_bytes: int,
                   requested, num_cores: int) -> int:
    """Sublane-aligned row tile sized to VMEM; block rows never exceed rows."""
    sublane = max(8, 32 // in_bytes, 32 // out_bytes)   # 8 f32, 16 bf16, 32 int8

    if rows <= sublane:
        return rows                                     # block == full array (legal)

    vmem_cap = _vmem_capacity_bytes()
    budget = int(0.6 * vmem_cap)
    # Per row of tile: double-buffered in & out blocks + f32 working set
    # (x.float() and normed temporaries).
    per_row = 2 * dim * (in_bytes + out_bytes) + 2 * dim * 4
    min_block = sublane * per_row + 8 * dim * 4 + (1 << 20)
    if min_block > int(0.92 * vmem_cap):
        # TODO(synk): add a split-dim two-pass reduction path for very large hidden dims.
        raise ValueError(
            f"RMSNorm hidden dim {dim} too large for a single-block-per-row layout "
            f"in {vmem_cap >> 20} MiB of VMEM")
    cap_tm = max(sublane, budget // per_row)

    tm = 512 if requested is None else int(requested)   # 512-class sweet spot (sweepable)
    tm = max(sublane, min(tm, cap_tm))
    tm = _round_down(tm, sublane)

    max_tm = _round_down(rows, sublane)                 # keep block rows <= rows
    if tm >= rows:
        # Whole problem fits in one tile.  Only split when there are 2 TCs
        # (v7x) and there is enough work for >=2 steps per core; otherwise a
        # single block avoids pointless per-step overhead on v5e/v6e.
        if num_cores >= 2 and rows >= 2 * num_cores * sublane:
            tm = _round_up(pl.cdiv(rows, 2 * num_cores), sublane)
        else:
            tm = max_tm
    return min(tm, max_tm)


def rmsnorm(x: jax.Array, weight: jax.Array, eps: float = 1e-6,
            *, row_tile=None, out_dtype=None) -> jax.Array:
    """RMSNorm over the last axis of x, matching the PyTorch module's math.

    out_dtype: defaults to x.dtype (low HBM-traffic path; the final weight
    multiply also runs in x.dtype).  Pass
    out_dtype=jnp.promote_types(x.dtype, weight.dtype) for strict torch output
    dtype parity (f32 output when x is bf16 and weight is f32).
    """
    orig_shape = x.shape
    dim = orig_shape[-1]
    assert weight.shape == (dim,)

    rows = 1
    for s in orig_shape[:-1]:
        rows *= s
    x2d = x.reshape(rows, dim)

    x_dtype = jnp.dtype(x.dtype)
    out_dtype = x_dtype if out_dtype is None else jnp.dtype(out_dtype)
    mul_dtype = x_dtype if out_dtype == x_dtype else jnp.float32
    w2d = weight.reshape(1, dim).astype(mul_dtype)

    in_bytes = x_dtype.itemsize
    out_bytes = out_dtype.itemsize

    num_cores = _num_tensorcores()
    tm = _pick_row_tile(rows, dim, in_bytes, out_bytes, row_tile, num_cores)
    grid_m = pl.cdiv(rows, tm)          # ragged final block; no pad, no slice

    # Scoped VMEM: double-buffered x & out blocks + f32 working set + padded
    # weight block + headroom, capped below physical capacity (128 MiB on
    # v5e/v6e, 64 MiB on v7x).
    vmem_cap = _vmem_capacity_bytes()
    needed = (2 * tm * dim * (in_bytes + out_bytes)   # double-buffered in/out blocks
              + 2 * tm * dim * 4                      # f32 temporaries (x.float(), normed)
              + 2 * 8 * dim * 4                       # weight block padded to 8 sublanes
              + (2 << 20))                            # compiler headroom
    vmem_limit = int(min(0.92 * vmem_cap, max(needed, 32 << 20)))

    cost = pl.CostEstimate(
        flops=4 * rows * dim,
        transcendentals=rows,
        bytes_accessed=rows * dim * (in_bytes + out_bytes)
        + dim * jnp.dtype(weight.dtype).itemsize,
    )

    out2d = pl.pallas_call(
        functools.partial(_rmsnorm_kernel, eps=eps, inv_dim=1.0 / dim),
        out_shape=jax.ShapeDtypeStruct((rows, dim), out_dtype),
        grid_spec=pltpu.PrefetchScalarGridSpec(
            num_scalar_prefetch=0,
            grid=(grid_m,),
            in_specs=[
                pl.BlockSpec((tm, dim), lambda i: (i, 0)),   # x row tile
                pl.BlockSpec((1, dim), lambda i: (0, 0)),    # weight (broadcast)
            ],
            out_specs=pl.BlockSpec((tm, dim), lambda i: (i, 0)),
        ),
        compiler_params=pltpu.CompilerParams(
            dimension_semantics=("parallel",),               # megacore-shardable
            vmem_limit_bytes=vmem_limit,
        ),
        cost_estimate=cost,
    )(x2d, w2d)

    return out2d.reshape(orig_shape[:-1] + (dim,))


if __name__ == "__main__":
    # Small shapes consistent with the module: batch=2, seq=8, hidden=128.
    batch, seq, dim = 2, 8, 128
    eps = 1e-6

    key = jax.random.PRNGKey(0)
    x = jax.random.normal(key, (batch, seq, dim), dtype=jnp.float32)

    # Deterministic parameter init, same as nn.Parameter(torch.ones(dim)).
    weight = jnp.ones((dim,), dtype=jnp.float32)

    out = jax.block_until_ready(rmsnorm(x, weight, eps))

    # Pure-JAX reference (PyTorch semantics).
    xf = x.astype(jnp.float32)
    ref = (xf * lax.rsqrt(jnp.mean(xf * xf, axis=-1, keepdims=True) + eps)
           ).astype(x.dtype) * weight
    assert out.shape == x.shape and out.dtype == x.dtype
    assert jnp.allclose(out, ref, atol=1e-5, rtol=1e-5)

    # bf16 activations with a non-divisible row count and a forced small tile:
    # exercises the pad-free ragged final block (21 rows, tile 16 -> grid of 2)
    # and the default low-traffic bf16-output path.
    xb = jax.random.normal(jax.random.PRNGKey(1), (3, 7, dim), dtype=jnp.bfloat16)
    outb = jax.block_until_ready(rmsnorm(xb, weight, eps, row_tile=16))
    xbf = xb.astype(jnp.float32)
    refb = (xbf * lax.rsqrt(jnp.mean(xbf * xbf, axis=-1, keepdims=True) + eps)
            ).astype(xb.dtype).astype(jnp.float32) * weight
    assert outb.shape == xb.shape and outb.dtype == jnp.bfloat16
    assert jnp.allclose(outb.astype(jnp.float32), refb, atol=3e-2, rtol=3e-2)

    # Strict torch-parity dtype path (promoted f32 output for bf16 input).
    outp = jax.block_until_ready(
        rmsnorm(xb, weight, eps, out_dtype=jnp.promote_types(xb.dtype, weight.dtype)))
    assert outp.shape == xb.shape and outp.dtype == jnp.float32
    assert jnp.allclose(outp, refb, atol=3e-2, rtol=3e-2)

    print("KERNEL_OK")
</pallas_src>

<mosaic_0001>
module attributes {stable_mosaic.version = 11 : i64} {
  func.func @_rmsnorm_kernel(%arg0: i32, %arg1: memref<16x128xf32, #tpu.memory_space<vmem>>, %arg2: memref<1x128xf32, #tpu.memory_space<vmem>>, %arg3: memref<16x128xf32, #tpu.memory_space<vmem>>) attributes {dimension_semantics = [#tpu.dimension_semantics<parallel>], iteration_bounds = array<i64: 1>, scalar_prefetch = 0 : i64, scratch_operands = 0 : i64, tpu.core_type = #tpu.core_type<tc>, window_params = [{transform_indices = @transform_0, window_bounds = array<i64: 16, 128>}, {pipeline_mode = #tpu.pipeline_mode<synchronous>, transform_indices = @transform_1, window_bounds = array<i64: 1, 128>}, {transform_indices = @transform_2, window_bounds = array<i64: 16, 128>}]} {
    %c0 = arith.constant 0 : index
    %c0_0 = arith.constant 0 : index
    %0 = vector.load %arg1[%c0, %c0_0] : memref<16x128xf32, #tpu.memory_space<vmem>>, vector<16x128xf32>
    %1 = arith.mulf %0, %0 : vector<16x128xf32>
    %cst = arith.constant dense<0.000000e+00> : vector<16xf32>
    %2 = vector.multi_reduction <add>, %1, %cst [1] : vector<16x128xf32> to vector<16xf32>
    %3 = vector.shape_cast %2 : vector<16xf32> to vector<16x1xf32>
    %cst_1 = arith.constant 7.812500e-03 : f32
    %4 = vector.broadcast %cst_1 : f32 to vector<16x1xf32>
    %5 = arith.mulf %3, %4 : vector<16x1xf32>
    %cst_2 = arith.constant 9.99999997E-7 : f32
    %6 = vector.broadcast %cst_2 : f32 to vector<16x1xf32>
    %7 = arith.addf %5, %6 : vector<16x1xf32>
    %8 = math.rsqrt %7 : vector<16x1xf32>
    %9 = vector.broadcast %8 : vector<16x1xf32> to vector<16x128xf32>
    %10 = arith.mulf %0, %9 : vector<16x128xf32>
    %c0_3 = arith.constant 0 : index
    %c0_4 = arith.constant 0 : index
    %11 = vector.load %arg2[%c0_3, %c0_4] : memref<1x128xf32, #tpu.memory_space<vmem>>, vector<1x128xf32>
    %12 = vector.broadcast %11 : vector<1x128xf32> to vector<16x128xf32>
    %13 = arith.mulf %10, %12 : vector<16x128xf32>
    %c0_5 = arith.constant 0 : index
    %c0_6 = arith.constant 0 : index
    %14 = vector.load %arg3[%c0_5, %c0_6] : memref<16x128xf32, #tpu.memory_space<vmem>>, vector<16x128xf32>
    tpu.vector_store %arg3[%c0_5, %c0_6], %13 {strides = array<i32>} : memref<16x128xf32, #tpu.memory_space<vmem>>, vector<16x128xf32>,
    return
  }
  func.func @transform_0(%arg0: i32) -> (i32, i32) {
    %c0_i32 = arith.constant 0 : i32
    %c0_i32_0 = arith.constant 0 : i32
    return %arg0, %c0_i32 : i32, i32
  }
  func.func @transform_1(%arg0: i32) -> (i32, i32) {
    %c0_i32 = arith.constant 0 : i32
    %c0_i32_0 = arith.constant 0 : i32
    %c0_i32_1 = arith.constant 0 : i32
    return %c0_i32, %c0_i32_0 : i32, i32
  }
  func.func @transform_2(%arg0: i32) -> (i32, i32) {
    %c0_i32 = arith.constant 0 : i32
    %c0_i32_0 = arith.constant 0 : i32
    return %arg0, %c0_i32 : i32, i32
  }
}

</mosaic_0001>

<bundles_post_ra>
// kernel: tpu_custom_call.1
= control target key start
LH: loop header
LB: loop body
LE: loop exit
PB: predicated region body
PF: predicated region fallthrough
CT: control target
= control target key end

     0   :  { %7 = vsyncpa [#allocation3], 0  ;;  %s227_s0 = inlined_call_operand.hbm [shape: f32[16,128], index: 0, kind: input, shape index: {}]   ;;  %s228_s1 = inlined_call_operand.hbm [shape: f32[1,128], index: 1, kind: input, shape index: {}]   ;;  %s229_s2 = inlined_call_operand.hbm [shape: f32[16,128], index: 2, kind: output, shape index: {}]  }
   0x1   :  { %8 = vsyncpa [#allocation6], 0 }
   0x2   :  { %9 = vsyncpa [#allocation4], 0  ;;  %s14_s11 = sshll.u32 %s227_s0, 4  ;;  %s192_s12 = smov [#allocation2]   ;;  %s15_s11 = int_to_ptr.hbm [resolvable:$true] %s14_s11 }
   0x3   :  { %s16_s13 = sshll.u32 %s192_s12, 4  ;;  %s28_s16 = sshll.u32 %s228_s1, 4  ;;  %s17_s13 = int_to_ptr.vmem [resolvable:$true] %s16_s13  ;;  %s29_s16 = int_to_ptr.hbm [resolvable:$true] %s28_s16 }
   0x4   :  { %s193_s17 = smov 128   ;;  %s194_s18 = smov 8  }
   0x5   :  { %22 = dma.hbm_to_vmem [thread:$0]  %s15_s11, 256, %s17_s13, [#allocation3], %s193_s17, %s193_s17, %s194_s18  }
   0x6   :  { %s195_s19 = smov [#allocation5]  }
   0x7   :  { %s30_s20 = sshll.u32 %s195_s19, 4  ;;  %s31_s20 = int_to_ptr.vmem [resolvable:$true] %s30_s20 }
   0x8   :  { %33 = dma.hbm_to_vmem [thread:$0]  %s29_s16, 16, %s31_s20, [#allocation6]  }
   0x9   :  { %186 = dma.done.wait [#allocation3], 256  }
   0xa   :  { %187 = vsyncadd [#allocation3], 4294967040 }
   0xb   :  { %188 = dma.done.wait [#allocation6], 16  }
   0xc   :  { %189 = vsyncadd [#allocation6], 4294967280  ;;  %v42_v0 = vld [vmem:[#allocation2] sm:$0xff]  ;;  %v43_v2 = vld [vmem:[#allocation2 + $0x8] sm:$0xff]  ;;  %s196_s0 = smov [#allocation7]   ;;  %s90_s23 = sshll.u32 %s229_s2, 4  ;;  %s91_s23 = int_to_ptr.hbm [resolvable:$true] %s90_s23 }
   0xd   :  { %v44_v1 = vmul.f32 %v42_v0, %v42_v0  ;;  %v45_v3 = vmul.f32 %v43_v2, %v43_v2  ;;  %v109_v18 = vld [vmem:[#allocation5] ss:$0 sm:$0xff]  ;;  %s88_s1 = sshll.u32 %s196_s0, 4  ;;  %s89_s1 = int_to_ptr.vmem [resolvable:$true] %s88_s1 }
   0xf   :  { %46 = vadd.xlane.f32.xlu0 %v44_v1 }
  0x17   :  { %48 = vadd.xlane.f32.xlu0 %v45_v3 }
  0x82   :  { %v47_v4 = vpop.xlane.xlu0 %46 }
  0x83   :  { %v50_v5 = vmul.f32 0.0078125, %v47_v4 }
  0x85   :  { %v52_v6 = vadd.f32 1e-06, %v50_v5 }
  0x87   :  { %110 = vrsqrt.f32 %v52_v6  ;;  %vm60_vm1 = vweird.f32 %v52_v6 }
  0x8a   :  { %v49_v7 = vpop.xlane.xlu0 %48 }
  0x8b   :  { %v51_v8 = vmul.f32 0.0078125, %v49_v7 }
  0x8d   :  { %v111_v9 = vpop.eup %110  ;;  %v53_v10 = vadd.f32 1e-06, %v51_v8 }
  0x8e   :  { %v55_v11 = vmul.f32 %v111_v9, %v52_v6  ;;  %vm61_vm0 = vweird.f32 %v111_v9 }
  0x8f   :  { %112 = vrsqrt.f32 %v53_v10  ;;  %vm62_vm2 = vmor %vm60_vm1, %vm61_vm0  ;;  %vm70_vm4 = vweird.f32 %v53_v10 }
  0x90   :  { %v56_v12 = vmul.f32 %v111_v9, %v55_v11 }
  0x92   :  { %v57_v13 = vmul.f32 0.5, %v56_v12 }
  0x94   :  { %v58_v14 = vsub.f32 1.5, %v57_v13 }
  0x95   :  { %v113_v15 = vpop.eup %112 }
  0x96   :  { %v59_v16 = vmul.f32 %v111_v9, %v58_v14  ;;  %v65_v17 = vmul.f32 %v113_v15, %v53_v10  ;;  %vm71_vm3 = vweird.f32 %v113_v15 }
  0x97   :  { %vm72_vm5 = vmor %vm70_vm4, %vm71_vm3 }
  0x98   :  { %v63_v19 = vsel %vm62_vm2, %v111_v9, %v59_v16  ;;  %v66_v20 = vmul.f32 %v113_v15, %v65_v17 }
  0x99   :  { %v74_v21 = vmul.f32 %v63_v19, %v42_v0 }
  0x9a   :  { %v67_v22 = vmul.f32 0.5, %v66_v20 }
  0x9b   :  { %v80_v23 = vmul.f32 %v109_v18, %v74_v21 }
  0x9c   :  { %v68_v24 = vsub.f32 1.5, %v67_v22 }
  0x9d   :  { %82 = vst [vmem:[#allocation7] sm:$0xff] %v80_v23 }
  0x9e   :  { %v69_v25 = vmul.f32 %v113_v15, %v68_v24 }
  0xa0   :  { %v73_v26 = vsel %vm72_vm5, %v113_v15, %v69_v25 }
  0xa1   :  { %v75_v27 = vmul.f32 %v73_v26, %v43_v2 }
  0xa3   :  { %v81_v28 = vmul.f32 %v109_v18, %v75_v27 }
  0xa5   :  { %83 = vst [vmem:[#allocation7 + $0x8] sm:$0xff] %v81_v28 }
  0xa6   :  { %96 = dma.vmem_to_hbm [thread:$0]  %s89_s1, 256, %s91_s23, [#allocation4], %s193_s17, %s193_s17, %s194_s18  }
  0xa7   :  { %190 = dma.done.wait [#allocation4], 256  }
  0xa8   :  { %191 = vsyncadd [#allocation4], 4294967040 }
  0xa9   :  { %101 = vsyncpa [#allocation3], 1 }
  0xaa   :  { %102 = vsyncpa [#allocation6], 1 }
  0xab   :  { %103 = vsyncpa [#allocation4], 1 }

</bundles_post_ra>
